<compile_context>
chip_gen: v6e
topology: v6e:2x2x1
jax: 0.10.0
libtpu: 0.0.40
codegen_flags: <defaults>
</compile_context>

<pallas_src>
import math

import jax
import jax.numpy as jnp
from jax.experimental import pallas as pl
from jax.experimental.pallas import tpu as pltpu


def _round_up(x, m):
    return -(-x // m) * m


def _mlp_kernel(obs_ref, act_ref,
                w1o_ref, w1a_ref, b1_ref,
                w2_ref, b2_ref,
                w3_ref, b3_ref,
                w4_ref, b4_ref,
                o_ref):
    """Fused 4-layer MLP on one (TB, .) batch tile; weights are VMEM-resident."""
    mm_dtype = w1o_ref.dtype  # f32, or bf16 when use_bf16_matmul=True

    def dense(x, w_ref, b_ref):
        # MXU matmul (optionally bf16 inputs) with f32 accumulation; bias in f32.
        return jnp.dot(x.astype(mm_dtype), w_ref[...],
                       preferred_element_type=jnp.float32) + b_ref[...]

    # Layer 1: split matmul over (observation, action) -> no concat needed.
    h = (jnp.dot(obs_ref[...].astype(mm_dtype), w1o_ref[...],
                 preferred_element_type=jnp.float32)
         + jnp.dot(act_ref[...].astype(mm_dtype), w1a_ref[...],
                   preferred_element_type=jnp.float32)
         + b1_ref[...])
    h = jnp.maximum(h, 0.0)                     # ReLU (Dropout -> identity)
    h = jnp.maximum(dense(h, w2_ref, b2_ref), 0.0)
    h = jnp.maximum(dense(h, w3_ref, b3_ref), 0.0)
    y = dense(h, w4_ref, b4_ref)                # (tb, padded_out) in f32
    # Only the logical output columns ever reach HBM (un-padded output block).
    o_ref[...] = y[:, :o_ref.shape[1]].astype(o_ref.dtype)


def forward_model_learner_forward(observation, action, params, output_dim,
                                  *, block_batch=4096, use_bf16_matmul=True):
    """JAX wrapper reproducing ForwardModelLearner.forward (eval-mode dropout).

    observation: (B, obs_dim) or (obs_dim,)
    action:      (B, act_dim) or (act_dim,)
    params:      dict from init_params (128-padded, (in, out)-layout weights).
    output_dim:  logical output width (kernel writes exactly this many columns).
    """
    if observation.ndim == 1:
        observation = observation[None, :]
    if action.ndim == 1:
        action = action[None, :]
    obs = observation.astype(jnp.float32)
    act = action.astype(jnp.float32)

    batch, obs_dim = obs.shape
    act_dim = act.shape[1]

    mm_dtype = jnp.bfloat16 if use_bf16_matmul else jnp.float32
    w1o = params["w1_obs"].astype(mm_dtype)
    w1a = params["w1_act"].astype(mm_dtype)
    w2 = params["w2"].astype(mm_dtype)
    w3 = params["w3"].astype(mm_dtype)
    w4 = params["w4"].astype(mm_dtype)
    b1, b2, b3, b4 = params["b1"], params["b2"], params["b3"], params["b4"]

    hp = w1o.shape[1]       # padded hidden width (layers 1-2)
    h3p = w3.shape[1]       # padded layer-3 width (logical 64)
    out_pad = w4.shape[1]   # padded layer-4 width inside the kernel
    assert output_dim <= out_pad

    weights = (w1o, w1a, b1, w2, b2, w3, b3, w4, b4)
    weight_bytes = sum(int(a.size) * a.dtype.itemsize for a in weights)

    # Chip-aware VMEM budget: v7x has 64 MiB physical per core vs 128 MiB on
    # v5e/v6e; request at most half the physical capacity as scoped VMEM.
    try:
        phys_vmem = int(getattr(pltpu.get_tpu_info(), "vmem_capacity_bytes",
                                64 << 20))
    except Exception:  # conservative fallback (v7x per-core size)
        phys_vmem = 64 << 20
    vmem_limit = int(min(phys_vmem // 2, 64 << 20))

    # Cap the batch tile so double-buffered I/O blocks + f32 activation slabs
    # + double-buffered resident weights stay well under the scoped limit.
    per_row_bytes = (2 * (obs_dim + act_dim) * 4   # obs/act blocks, x2 buffers
                     + 2 * output_dim * 4          # output block, x2 buffers
                     + 4 * hp * 4)                 # activation temporaries
    vmem_rows = (vmem_limit // 2 - 2 * weight_bytes) // per_row_bytes
    tb_max = max(8, min(int(block_batch), int(vmem_rows)) // 8 * 8)

    if batch <= tb_max:
        # Whole batch fits in one tile: split into two tiles when there is
        # enough work so the "parallel" axis can use both v7x TensorCores
        # (no-op / free on single-TC v5e/v6e).
        tb = _round_up(-(-batch // 2), 8) if batch >= 16 else _round_up(batch, 8)
    else:
        tb = tb_max
    batch_pad = _round_up(batch, tb)
    if batch_pad != batch:
        obs = jnp.pad(obs, ((0, batch_pad - batch), (0, 0)))
        act = jnp.pad(act, ((0, batch_pad - batch), (0, 0)))
    grid = (batch_pad // tb,)

    def batch_spec(feat):
        return pl.BlockSpec((tb, feat), lambda i: (i, 0))

    def resident_spec(arr):
        return pl.BlockSpec(arr.shape, lambda i: (0, 0))

    flops = 2 * batch_pad * (obs_dim * hp + act_dim * hp + hp * hp
                             + hp * h3p + h3p * out_pad)
    bytes_accessed = (4 * (obs.size + act.size + batch_pad * output_dim)
                      + weight_bytes)

    out = pl.pallas_call(
        _mlp_kernel,
        out_shape=jax.ShapeDtypeStruct((batch_pad, output_dim), jnp.float32),
        grid=grid,
        in_specs=[
            batch_spec(obs_dim), batch_spec(act_dim),
            resident_spec(w1o), resident_spec(w1a), resident_spec(b1),
            resident_spec(w2), resident_spec(b2),
            resident_spec(w3), resident_spec(b3),
            resident_spec(w4), resident_spec(b4),
        ],
        out_specs=pl.BlockSpec((tb, output_dim), lambda i: (i, 0)),
        compiler_params=pltpu.CompilerParams(
            dimension_semantics=("parallel",),
            vmem_limit_bytes=vmem_limit),
        cost_estimate=pl.CostEstimate(
            flops=flops, transcendentals=0, bytes_accessed=bytes_accessed),
    )(obs, act, w1o, w1a, b1, w2, b2, w3, b3, w4, b4)

    if batch_pad != batch:
        out = out[:batch]
    return out


def init_params(key, obs_dim, act_dim, output_dim, hidden_dim=64):
    """PyTorch nn.Linear-style init (uniform +/- 1/sqrt(fan_in)).

    Weights are stored as (in_features, out_features); hidden/64-wide feature
    dims are zero-padded to multiples of 128 once here (padding is exact:
    padded rows/cols and biases are zero).  W1 is split into an observation
    part and an action part so the kernel needs no concat.
    """
    input_dim = obs_dim + act_dim
    hp = _round_up(hidden_dim, 128)
    h3p = _round_up(64, 128)
    op = _round_up(output_dim, 128)

    def linear(k, fan_in, fan_out, pad_in, pad_out):
        kw, kb = jax.random.split(k)
        bound = 1.0 / math.sqrt(fan_in)
        w = jax.random.uniform(kw, (fan_in, fan_out), jnp.float32,
                               minval=-bound, maxval=bound)
        b = jax.random.uniform(kb, (1, fan_out), jnp.float32,
                               minval=-bound, maxval=bound)
        w = jnp.pad(w, ((0, pad_in - fan_in), (0, pad_out - fan_out)))
        b = jnp.pad(b, ((0, 0), (0, pad_out - fan_out)))
        return w, b

    k1, k2, k3, k4 = jax.random.split(key, 4)

    # Layer 1: one logical (input_dim, hidden_dim) matrix, split by input rows.
    kw1, kb1 = jax.random.split(k1)
    bound1 = 1.0 / math.sqrt(input_dim)
    w1 = jax.random.uniform(kw1, (input_dim, hidden_dim), jnp.float32,
                            minval=-bound1, maxval=bound1)
    b1 = jax.random.uniform(kb1, (1, hidden_dim), jnp.float32,
                            minval=-bound1, maxval=bound1)
    params = {
        "w1_obs": jnp.pad(w1[:obs_dim], ((0, 0), (0, hp - hidden_dim))),
        "w1_act": jnp.pad(w1[obs_dim:], ((0, 0), (0, hp - hidden_dim))),
        "b1": jnp.pad(b1, ((0, 0), (0, hp - hidden_dim))),
    }
    params["w2"], params["b2"] = linear(k2, hidden_dim, hidden_dim, hp, hp)
    params["w3"], params["b3"] = linear(k3, hidden_dim, 64, hp, h3p)
    params["w4"], params["b4"] = linear(k4, 64, output_dim, h3p, op)
    return params


if __name__ == "__main__":
    # Small shapes consistent with the module's forward:
    #   observation: (B, obs_dim), action: (B, act_dim), input_dim = obs+act.
    batch = 2
    obs_dim = 12
    act_dim = 4
    output_dim = 8
    hidden_dim = 32

    key = jax.random.PRNGKey(0)
    k_obs, k_act, k_params = jax.random.split(key, 3)

    observation = jax.random.normal(k_obs, (batch, obs_dim), jnp.float32)
    action = jax.random.normal(k_act, (batch, act_dim), jnp.float32)
    params = init_params(k_params, obs_dim, act_dim, output_dim, hidden_dim)

    # f32 path (exact against the reference).
    out = forward_model_learner_forward(observation, action, params, output_dim,
                                        use_bf16_matmul=False)
    out = jax.block_until_ready(out)

    # Pure-JAX reference (padded params are exact: padded entries are zero).
    x = jnp.concatenate([observation, action], axis=1)
    w1_full = jnp.concatenate([params["w1_obs"], params["w1_act"]], axis=0)
    h = jnp.maximum(x @ w1_full + params["b1"], 0.0)
    h = jnp.maximum(h @ params["w2"] + params["b2"], 0.0)
    h = jnp.maximum(h @ params["w3"] + params["b3"], 0.0)
    ref = (h @ params["w4"] + params["b4"])[:, :output_dim]

    assert out.shape == (batch, output_dim)
    assert jnp.allclose(out, ref, atol=1e-5, rtol=1e-5)

    # Default bf16-MXU path (v6e/v7x recommendation): f32 accumulation.
    out_bf16 = forward_model_learner_forward(observation, action, params,
                                             output_dim)
    out_bf16 = jax.block_until_ready(out_bf16)
    assert out_bf16.shape == (batch, output_dim)
    assert jnp.allclose(out_bf16, ref, atol=5e-2, rtol=5e-2)

    print("KERNEL_OK")
</pallas_src>

<mosaic_0001>
module attributes {stable_mosaic.version = 11 : i64} {
  func.func @_mlp_kernel(%arg0: i32, %arg1: memref<8x12xf32, #tpu.memory_space<vmem>>, %arg2: memref<8x4xf32, #tpu.memory_space<vmem>>, %arg3: memref<12x128xf32, #tpu.memory_space<vmem>>, %arg4: memref<4x128xf32, #tpu.memory_space<vmem>>, %arg5: memref<1x128xf32, #tpu.memory_space<vmem>>, %arg6: memref<128x128xf32, #tpu.memory_space<vmem>>, %arg7: memref<1x128xf32, #tpu.memory_space<vmem>>, %arg8: memref<128x128xf32, #tpu.memory_space<vmem>>, %arg9: memref<1x128xf32, #tpu.memory_space<vmem>>, %arg10: memref<128x128xf32, #tpu.memory_space<vmem>>, %arg11: memref<1x128xf32, #tpu.memory_space<vmem>>, %arg12: memref<8x8xf32, #tpu.memory_space<vmem>>) attributes {dimension_semantics = [#tpu.dimension_semantics<parallel>], iteration_bounds = array<i64: 1>, scalar_prefetch = 0 : i64, scratch_operands = 0 : i64, tpu.core_type = #tpu.core_type<tc>, window_params = [{transform_indices = @transform_0, window_bounds = array<i64: 8, 12>}, {transform_indices = @transform_1, window_bounds = array<i64: 8, 4>}, {pipeline_mode = #tpu.pipeline_mode<synchronous>, transform_indices = @transform_2, window_bounds = array<i64: 12, 128>}, {pipeline_mode = #tpu.pipeline_mode<synchronous>, transform_indices = @transform_3, window_bounds = array<i64: 4, 128>}, {pipeline_mode = #tpu.pipeline_mode<synchronous>, transform_indices = @transform_4, window_bounds = array<i64: 1, 128>}, {pipeline_mode = #tpu.pipeline_mode<synchronous>, transform_indices = @transform_5, window_bounds = array<i64: 128, 128>}, {pipeline_mode = #tpu.pipeline_mode<synchronous>, transform_indices = @transform_6, window_bounds = array<i64: 1, 128>}, {pipeline_mode = #tpu.pipeline_mode<synchronous>, transform_indices = @transform_7, window_bounds = array<i64: 128, 128>}, {pipeline_mode = #tpu.pipeline_mode<synchronous>, transform_indices = @transform_8, window_bounds = array<i64: 1, 128>}, {pipeline_mode = #tpu.pipeline_mode<synchronous>, transform_indices = @transform_9, window_bounds = array<i64: 128, 128>}, {pipeline_mode = #tpu.pipeline_mode<synchronous>, transform_indices = @transform_10, window_bounds = array<i64: 1, 128>}, {transform_indices = @transform_11, window_bounds = array<i64: 8, 8>}]} {
    %c0 = arith.constant 0 : index
    %c0_0 = arith.constant 0 : index
    %0 = vector.load %arg1[%c0, %c0_0] : memref<8x12xf32, #tpu.memory_space<vmem>>, vector<8x12xf32>
    %c0_1 = arith.constant 0 : index
    %c0_2 = arith.constant 0 : index
    %1 = vector.load %arg3[%c0_1, %c0_2] : memref<12x128xf32, #tpu.memory_space<vmem>>, vector<12x128xf32>
    %cst = arith.constant dense<0.000000e+00> : vector<8x128xf32>
    %2 = tpu.matmul %0, %1, %cst {dimension_numbers = #tpu.dot_dimension_numbers<[1], [0], [0], [1], [0, 0, 1, 1], [], []>} : vector<8x12xf32>, vector<12x128xf32>, vector<8x128xf32> -> vector<8x128xf32>
    %c0_3 = arith.constant 0 : index
    %c0_4 = arith.constant 0 : index
    %3 = vector.load %arg2[%c0_3, %c0_4] : memref<8x4xf32, #tpu.memory_space<vmem>>, vector<8x4xf32>
    %c0_5 = arith.constant 0 : index
    %c0_6 = arith.constant 0 : index
    %4 = vector.load %arg4[%c0_5, %c0_6] : memref<4x128xf32, #tpu.memory_space<vmem>>, vector<4x128xf32>
    %cst_7 = arith.constant dense<0.000000e+00> : vector<8x128xf32>
    %5 = tpu.matmul %3, %4, %cst_7 {dimension_numbers = #tpu.dot_dimension_numbers<[1], [0], [0], [1], [0, 0, 1, 1], [], []>} : vector<8x4xf32>, vector<4x128xf32>, vector<8x128xf32> -> vector<8x128xf32>
    %6 = arith.addf %2, %5 : vector<8x128xf32>
    %c0_8 = arith.constant 0 : index
    %c0_9 = arith.constant 0 : index
    %7 = vector.load %arg5[%c0_8, %c0_9] : memref<1x128xf32, #tpu.memory_space<vmem>>, vector<1x128xf32>
    %8 = vector.broadcast %7 : vector<1x128xf32> to vector<8x128xf32>
    %9 = arith.addf %6, %8 : vector<8x128xf32>
    %cst_10 = arith.constant 0.000000e+00 : f32
    %10 = vector.broadcast %cst_10 : f32 to vector<8x128xf32>
    %11 = arith.maximumf %9, %10 : vector<8x128xf32>
    %c0_11 = arith.constant 0 : index
    %c0_12 = arith.constant 0 : index
    %12 = vector.load %arg6[%c0_11, %c0_12] : memref<128x128xf32, #tpu.memory_space<vmem>>, vector<128x128xf32>
    %cst_13 = arith.constant dense<0.000000e+00> : vector<8x128xf32>
    %13 = tpu.matmul %11, %12, %cst_13 {dimension_numbers = #tpu.dot_dimension_numbers<[1], [0], [0], [1], [0, 0, 1, 1], [], []>} : vector<8x128xf32>, vector<128x128xf32>, vector<8x128xf32> -> vector<8x128xf32>
    %c0_14 = arith.constant 0 : index
    %c0_15 = arith.constant 0 : index
    %14 = vector.load %arg7[%c0_14, %c0_15] : memref<1x128xf32, #tpu.memory_space<vmem>>, vector<1x128xf32>
    %15 = vector.broadcast %14 : vector<1x128xf32> to vector<8x128xf32>
    %16 = arith.addf %13, %15 : vector<8x128xf32>
    %cst_16 = arith.constant 0.000000e+00 : f32
    %17 = vector.broadcast %cst_16 : f32 to vector<8x128xf32>
    %18 = arith.maximumf %16, %17 : vector<8x128xf32>
    %c0_17 = arith.constant 0 : index
    %c0_18 = arith.constant 0 : index
    %19 = vector.load %arg8[%c0_17, %c0_18] : memref<128x128xf32, #tpu.memory_space<vmem>>, vector<128x128xf32>
    %cst_19 = arith.constant dense<0.000000e+00> : vector<8x128xf32>
    %20 = tpu.matmul %18, %19, %cst_19 {dimension_numbers = #tpu.dot_dimension_numbers<[1], [0], [0], [1], [0, 0, 1, 1], [], []>} : vector<8x128xf32>, vector<128x128xf32>, vector<8x128xf32> -> vector<8x128xf32>
    %c0_20 = arith.constant 0 : index
    %c0_21 = arith.constant 0 : index
    %21 = vector.load %arg9[%c0_20, %c0_21] : memref<1x128xf32, #tpu.memory_space<vmem>>, vector<1x128xf32>
    %22 = vector.broadcast %21 : vector<1x128xf32> to vector<8x128xf32>
    %23 = arith.addf %20, %22 : vector<8x128xf32>
    %cst_22 = arith.constant 0.000000e+00 : f32
    %24 = vector.broadcast %cst_22 : f32 to vector<8x128xf32>
    %25 = arith.maximumf %23, %24 : vector<8x128xf32>
    %c0_23 = arith.constant 0 : index
    %c0_24 = arith.constant 0 : index
    %26 = vector.load %arg10[%c0_23, %c0_24] : memref<128x128xf32, #tpu.memory_space<vmem>>, vector<128x128xf32>
    %cst_25 = arith.constant dense<0.000000e+00> : vector<8x128xf32>
    %27 = tpu.matmul %25, %26, %cst_25 {dimension_numbers = #tpu.dot_dimension_numbers<[1], [0], [0], [1], [0, 0, 1, 1], [], []>} : vector<8x128xf32>, vector<128x128xf32>, vector<8x128xf32> -> vector<8x128xf32>
    %c0_26 = arith.constant 0 : index
    %c0_27 = arith.constant 0 : index
    %28 = vector.load %arg11[%c0_26, %c0_27] : memref<1x128xf32, #tpu.memory_space<vmem>>, vector<1x128xf32>
    %29 = vector.broadcast %28 : vector<1x128xf32> to vector<8x128xf32>
    %30 = arith.addf %27, %29 : vector<8x128xf32>
    %31 = vector.extract_strided_slice %30 {offsets = [0, 0], sizes = [8, 8], strides = [1, 1]} : vector<8x128xf32> to vector<8x8xf32>
    %c0_28 = arith.constant 0 : index
    %c0_29 = arith.constant 0 : index
    %32 = vector.load %arg12[%c0_28, %c0_29] : memref<8x8xf32, #tpu.memory_space<vmem>>, vector<8x8xf32>
    tpu.vector_store %arg12[%c0_28, %c0_29], %31 {strides = array<i32>} : memref<8x8xf32, #tpu.memory_space<vmem>>, vector<8x8xf32>,
    return
  }
  func.func @transform_0(%arg0: i32) -> (i32, i32) {
    %c0_i32 = arith.constant 0 : i32
    %c0_i32_0 = arith.constant 0 : i32
    return %arg0, %c0_i32 : i32, i32
  }
  func.func @transform_1(%arg0: i32) -> (i32, i32) {
    %c0_i32 = arith.constant 0 : i32
    %c0_i32_0 = arith.constant 0 : i32
    return %arg0, %c0_i32 : i32, i32
  }
  func.func @transform_2(%arg0: i32) -> (i32, i32) {
    %c0_i32 = arith.constant 0 : i32
    %c0_i32_0 = arith.constant 0 : i32
    %c0_i32_1 = arith.constant 0 : i32
    return %c0_i32, %c0_i32_0 : i32, i32
  }
  func.func @transform_3(%arg0: i32) -> (i32, i32) {
    %c0_i32 = arith.constant 0 : i32
    %c0_i32_0 = arith.constant 0 : i32
    %c0_i32_1 = arith.constant 0 : i32
    return %c0_i32, %c0_i32_0 : i32, i32
  }
  func.func @transform_4(%arg0: i32) -> (i32, i32) {
    %c0_i32 = arith.constant 0 : i32
    %c0_i32_0 = arith.constant 0 : i32
    %c0_i32_1 = arith.constant 0 : i32
    return %c0_i32, %c0_i32_0 : i32, i32
  }
  func.func @transform_5(%arg0: i32) -> (i32, i32) {
    %c0_i32 = arith.constant 0 : i32
    %c0_i32_0 = arith.constant 0 : i32
    %c0_i32_1 = arith.constant 0 : i32
    return %c0_i32, %c0_i32_0 : i32, i32
  }
  func.func @transform_6(%arg0: i32) -> (i32, i32) {
    %c0_i32 = arith.constant 0 : i32
    %c0_i32_0 = arith.constant 0 : i32
    %c0_i32_1 = arith.constant 0 : i32
    return %c0_i32, %c0_i32_0 : i32, i32
  }
  func.func @transform_7(%arg0: i32) -> (i32, i32) {
    %c0_i32 = arith.constant 0 : i32
    %c0_i32_0 = arith.constant 0 : i32
    %c0_i32_1 = arith.constant 0 : i32
    return %c0_i32, %c0_i32_0 : i32, i32
  }
  func.func @transform_8(%arg0: i32) -> (i32, i32) {
    %c0_i32 = arith.constant 0 : i32
    %c0_i32_0 = arith.constant 0 : i32
    %c0_i32_1 = arith.constant 0 : i32
    return %c0_i32, %c0_i32_0 : i32, i32
  }
  func.func @transform_9(%arg0: i32) -> (i32, i32) {
    %c0_i32 = arith.constant 0 : i32
    %c0_i32_0 = arith.constant 0 : i32
    %c0_i32_1 = arith.constant 0 : i32
    return %c0_i32, %c0_i32_0 : i32, i32
  }
  func.func @transform_10(%arg0: i32) -> (i32, i32) {
    %c0_i32 = arith.constant 0 : i32
    %c0_i32_0 = arith.constant 0 : i32
    %c0_i32_1 = arith.constant 0 : i32
    return %c0_i32, %c0_i32_0 : i32, i32
  }
  func.func @transform_11(%arg0: i32) -> (i32, i32) {
    %c0_i32 = arith.constant 0 : i32
    %c0_i32_0 = arith.constant 0 : i32
    return %arg0, %c0_i32 : i32, i32
  }
}

</mosaic_0001>

<bundles_post_ra>
// kernel: tpu_custom_call.1
= control target key start
LH: loop header
LB: loop body
LE: loop exit
PB: predicated region body
PF: predicated region fallthrough
CT: control target
= control target key end

     0   :  { %16 = vsyncpa [#allocation3], 0  ;;  %s1039_s0 = inlined_call_operand.vmem [shape: f32[8,12], index: 0, kind: input, shape index: {}]   ;;  %s1040_s1 = inlined_call_operand.vmem [shape: f32[8,4], index: 1, kind: input, shape index: {}]   ;;  %s1041_s2 = inlined_call_operand.hbm [shape: f32[12,128], index: 2, kind: input, shape index: {}]   ;;  %s1042_s3 = inlined_call_operand.vmem [shape: f32[4,128], index: 3, kind: input, shape index: {}]   ;;  %s1043_s4 = inlined_call_operand.vmem [shape: f32[1,128], index: 4, kind: input, shape index: {}]   ;;  %s1044_s5 = inlined_call_operand.hbm [shape: f32[128,128], index: 5, kind: input, shape index: {}]   ;;  %s1045_s6 = inlined_call_operand.vmem [shape: f32[1,128], index: 6, kind: input, shape index: {}]   ;;  %s1046_s7 = inlined_call_operand.hbm [shape: f32[128,128], index: 7, kind: input, shape index: {}]   ;;  %s1047_s8 = inlined_call_operand.vmem [shape: f32[1,128], index: 8, kind: input, shape index: {}]   ;;  %s1048_s9 = inlined_call_operand.hbm [shape: f32[128,128], index: 9, kind: input, shape index: {}]   ;;  %s1049_s10 = inlined_call_operand.vmem [shape: f32[1,128], index: 10, kind: input, shape index: {}]   ;;  %s1050_s11 = inlined_call_operand.hbm [shape: f32[8,8], index: 11, kind: output, shape index: {}]  }
   0x1   :  { %17 = vsyncpa [#allocation6], 0 }
   0x2   :  { %18 = vsyncpa [#allocation9], 0 }
   0x3   :  { %19 = vsyncpa [#allocation4], 0  ;;  %s861_s17 = smov [#allocation5]   ;;  %s862_s19 = smov [#allocation2]  }
   0x4   :  { %s45_s18 = sshll.u32 %s861_s17, 4  ;;  %s29_s20 = sshll.u32 %s862_s19, 4  ;;  %s46_s18 = int_to_ptr.vmem [resolvable:$true] %s45_s18  ;;  %s30_s20 = int_to_ptr.vmem [resolvable:$true] %s29_s20 }
   0x5   :  { %s761_s21 = scalar_lea.vmem %s46_s18, 2048  ;;  %p766_p1 = scmp.lt.s32.totalorder %s46_s18, %s46_s18 }
   0x6   :  { %p762_p0 = scmp.ne.s32.totalorder %s46_s18, %s761_s21  ;;  %p767_p2 = scmp.lt.s32.totalorder %s761_s21, %s761_s21 }
   0x8   :  { %p768_p3 = por %p767_p2, %p766_p1 }
   0xa   :  { %p769_p4 = pnand %p768_p3, %p762_p0 }
   0xc   :  { %772 = shalt.err (!%p769_p4)
}
   0xd   :  { %s863_s22 = smov 128   ;;  %s864_s23 = smov 8  }
   0xe   :  { %51 = dma.hbm_to_vmem [thread:$0]  %s1044_s5, 2048, %s46_s18, [#allocation6], %s863_s22, %s863_s22, %s864_s23  }
   0xf   :  { %s781_s26 = scalar_lea.vmem %s30_s20, 256  ;;  %p786_p6 = scmp.lt.s32.totalorder %s30_s20, %s30_s20 }
  0x10   :  { %p782_p5 = scmp.ne.s32.totalorder %s30_s20, %s781_s26  ;;  %p787_p7 = scmp.lt.s32.totalorder %s781_s26, %s781_s26 }
  0x12   :  { %p788_p8 = por %p787_p7, %p786_p6 }
  0x14   :  { %p789_p9 = pnand %p788_p8, %p782_p5 }
  0x16   :  { %792 = shalt.err (!%p789_p9)
}
  0x17   :  { %35 = dma.hbm_to_vmem [thread:$0]  %s1041_s2, 256, %s30_s20, [#allocation3], %s863_s22, %s863_s22, %s864_s23  }
  0x18   :  { %s865_s29 = smov [#allocation7]   ;;  %s866_s12 = smov [#allocation8]  }
  0x19   :  { %s59_s30 = sshll.u32 %s865_s29, 4  ;;  %s73_s13 = sshll.u32 %s866_s12, 4  ;;  %s60_s30 = int_to_ptr.vmem [resolvable:$true] %s59_s30  ;;  %s74_s13 = int_to_ptr.vmem [resolvable:$true] %s73_s13 }
  0x1a   :  { %s801_s5 = scalar_lea.vmem %s60_s30, 2048  ;;  %p806_p11 = scmp.lt.s32.totalorder %s60_s30, %s60_s30 }
  0x1b   :  { %p802_p10 = scmp.ne.s32.totalorder %s60_s30, %s801_s5  ;;  %p807_p12 = scmp.lt.s32.totalorder %s801_s5, %s801_s5 }
  0x1d   :  { %p808_p13 = por %p807_p12, %p806_p11 }
  0x1f   :  { %p809_p0 = pnand %p808_p13, %p802_p10 }
  0x21   :  { %812 = shalt.err (!%p809_p0)
}
  0x22   :  { %65 = dma.hbm_to_vmem [thread:$0]  %s1046_s7, 2048, %s60_s30, [#allocation6], %s863_s22, %s863_s22, %s864_s23  }
  0x23   :  { %s821_s2 = scalar_lea.vmem %s74_s13, 2048  ;;  %p826_p2 = scmp.lt.s32.totalorder %s74_s13, %s74_s13 }
  0x24   :  { %p822_p1 = scmp.ne.s32.totalorder %s74_s13, %s821_s2  ;;  %p827_p3 = scmp.lt.s32.totalorder %s821_s2, %s821_s2 }
  0x26   :  { %p828_p4 = por %p827_p3, %p826_p2 }
  0x28   :  { %p829_p5 = pnand %p828_p4, %p822_p1 }
  0x2a   :  { %832 = shalt.err (!%p829_p5)
}
  0x2b   :  { %79 = dma.hbm_to_vmem [thread:$0]  %s1048_s9, 2048, %s74_s13, [#allocation9], %s863_s22, %s863_s22, %s864_s23  }
  0x2c   :  { %853 = dma.done.wait [#allocation3], 256  }
  0x2d   :  { %854 = vsyncadd [#allocation3], 4294967040 }
  0x2e   :  { %855 = dma.done.wait [#allocation6], 4096  }
  0x2f   :  { %856 = vsyncadd [#allocation6], 4294963200 }
  0x30   :  { %857 = dma.done.wait [#allocation9], 2048  }
  0x31   :  { %858 = vsyncadd [#allocation9], 4294965248  ;;  %v867_v0 = vmov 0.0   ;;  %vm868_vm0 = vmmov 0   ;;  %vm103_vm1 = vcmask 1043456   ;;  %vm99_vm2 = vcmask 31744  }
  0x32   :  { %627 = vmatprep.subr.mxu1 %v867_v0  ;;  %629 = vmatprep.mubr.msk.f32.mxu1 %vm868_vm0, %v867_v0  ;;  %v98_v1 = vld [vmem:[%s1042_s3] sm:$0xf]  ;;  %v96_v3 = vld [vmem:[#allocation2 + $0x8] sm:$0xf]  ;;  %vm177_vm3 = vcmask 97280   ;;  %v276_v8 = vld [vmem:[#allocation5 + $0x68] sm:$0xff] }
  0x33   :  { %639 = vmatprep.subr.mxu0 %v867_v0  ;;  %671 = vmatprep.mubr.msk.f32.mxu0 %vm868_vm0, %v867_v0  ;;  %v97_v2 = vld [vmem:[%s1040_s1] sm:$0xff]  ;;  %v278_v4 = vld [vmem:[#allocation5 + $0x78] sm:$0xff]  ;;  %v275_v9 = vld [vmem:[#allocation5 + $0x60] sm:$0xff]  ;;  %s869_s25 = smov [#allocation10]   ;;  %vm544_vm4 = vcmask 64512  }
  0x34   :  { %628 = vmatpush3.msk.msra.mxu1 %vm103_vm1, %v98_v1  ;;  %v95_v5 = vld [vmem:[#allocation2] sm:$0xff]  ;;  %640 = vmatpush3.msra.mxu0 %v278_v4  ;;  %v274_v10 = vld [vmem:[#allocation5 + $0x58] sm:$0xff]  ;;  %v272_v12 = vld [vmem:[#allocation5 + $0x48] sm:$0xff]  ;;  %s552_s26 = sshll.u32 %s869_s25, 4  ;;  %s553_s26 = int_to_ptr.vmem [resolvable:$true] %s552_s26 }
  0x35   :  { %630 = vmatmul.mubr.msk.f32.vlgmr.msra.gmra.mxu1 %vm99_vm2, %v97_v2  ;;  %632 = vmatprep.subr.mxu1 %v867_v0  ;;  %v94_v6 = vld [vmem:[%s1039_s0] sm:$0xff]  ;;  %v271_v13 = vld [vmem:[#allocation5 + $0x40] sm:$0xff]  ;;  %v270_v14 = vld [vmem:[#allocation5 + $0x38] sm:$0xff]  ;;  %s833_s27 = scalar_lea.vmem %s553_s26, 128  ;;  %p838_p7 = scmp.lt.s32.totalorder %s553_s26, %s553_s26 }
  0x36   :  { %633 = vmatpush3.msk.msra.mxu1 %vm103_vm1, %v96_v3  ;;  %636 = vmatprep.mubr.msk.f32.mxu1 %vm868_vm0, %v867_v0  ;;  %v277_v7 = vld [vmem:[#allocation5 + $0x70] sm:$0xff]  ;;  %v268_v16 = vld [vmem:[#allocation5 + $0x28] sm:$0xff]  ;;  %v267_v17 = vld [vmem:[#allocation5 + $0x20] sm:$0xff]  ;;  %p834_p6 = scmp.ne.s32.totalorder %s553_s26, %s833_s27  ;;  %p839_p8 = scmp.lt.s32.totalorder %s833_s27, %s833_s27 }
  0x37   :  { %634 = vmatprep.subr.mxu1 %v867_v0  ;;  %641 = vmatprep.subr.mxu0 %v867_v0  ;;  %v273_v11 = vld [vmem:[#allocation5 + $0x50] sm:$0xff]  ;;  %v266_v18 = vld [vmem:[#allocation5 + $0x18] sm:$0xff]  ;;  %v264_v20 = vld [vmem:[#allocation5 + $0x8] sm:$0xff] }
  0x38   :  { %635 = vmatpush3.msra.mxu1 %v95_v5  ;;  %642 = vmatpush3.msra.mxu0 %v277_v7  ;;  %v269_v15 = vld [vmem:[#allocation5 + $0x30] sm:$0xff]  ;;  %v263_v21 = vld [vmem:[#allocation5] sm:$0xff]  ;;  %v372_v22 = vld [vmem:[#allocation7 + $0x78] sm:$0xff]  ;;  %p840_p9 = por %p839_p8, %p838_p7 }
  0x39   :  { %637 = vmatmul.mubr.msk.f32.vlgmr.msra.gmra.mxu1 %vm177_vm3, %v94_v6  ;;  %643 = vmatprep.subr.mxu0 %v867_v0  ;;  %v265_v19 = vld [vmem:[#allocation5 + $0x10] sm:$0xff]  ;;  %v370_v24 = vld [vmem:[#allocation7 + $0x68] sm:$0xff]  ;;  %v369_v25 = vld [vmem:[#allocation7 + $0x60] sm:$0xff] }
  0x3a   :  { %674 = vmatprep.subr.mxu1 %v867_v0  ;;  %644 = vmatpush3.msra.mxu0 %v276_v8  ;;  %v371_v23 = vld [vmem:[#allocation7 + $0x70] sm:$0xff]  ;;  %v368_v26 = vld [vmem:[#allocation7 + $0x58] sm:$0xff]  ;;  %v366_v28 = vld [vmem:[#allocation7 + $0x48] sm:$0xff]  ;;  %p841_p10 = pnand %p840_p9, %p834_p6 }
  0x3b   :  { %706 = vmatprep.mubr.msk.f32.mxu1 %vm868_vm0, %v867_v0  ;;  %645 = vmatprep.subr.mxu0 %v867_v0  ;;  %v367_v27 = vld [vmem:[#allocation7 + $0x50] sm:$0xff]  ;;  %v365_v29 = vld [vmem:[#allocation7 + $0x40] sm:$0xff]  ;;  %v364_v30 = vld [vmem:[#allocation7 + $0x38] sm:$0xff] }
  0x3c   :  { %646 = vmatpush3.msra.mxu0 %v275_v9  ;;  %675 = vmatpush3.msra.mxu1 %v372_v22  ;;  %v363_v31 = vld [vmem:[#allocation7 + $0x30] sm:$0xff]  ;;  %v362_v32 = vld [vmem:[#allocation7 + $0x28] sm:$0xff]  ;;  %v361_v33 = vld [vmem:[#allocation7 + $0x20] sm:$0xff] }
  0x3d   :  { %647 = vmatprep.subr.mxu0 %v867_v0  ;;  %676 = vmatprep.subr.mxu1 %v867_v0  ;;  %v360_v34 = vld [vmem:[#allocation7 + $0x18] sm:$0xff]  ;;  %v567_v38 = vld [vmem:[%s1043_s4] ss:$0 sm:$0xff]  ;;  %v358_v44 = vld [vmem:[#allocation7 + $0x8] sm:$0xff] }
  0x3e   :  { %648 = vmatpush3.msra.mxu0 %v274_v10  ;;  %677 = vmatpush3.msra.mxu1 %v371_v23  ;;  %v359_v43 = vld [vmem:[#allocation7 + $0x10] sm:$0xff]  ;;  %v357_v45 = vld [vmem:[#allocation7] sm:$0xff]  ;;  %v466_v46 = vld [vmem:[#allocation8 + $0x78] sm:$0xff] }
  0x3f   :  { %649 = vmatprep.subr.mxu0 %v867_v0  ;;  %678 = vmatprep.subr.mxu1 %v867_v0  ;;  %v465_v47 = vld [vmem:[#allocation8 + $0x70] sm:$0xff]  ;;  %v464_v48 = vld [vmem:[#allocation8 + $0x68] sm:$0xff]  ;;  %v463_v49 = vld [vmem:[#allocation8 + $0x60] sm:$0xff] }
  0x40   :  { %650 = vmatpush3.msra.mxu0 %v273_v11  ;;  %679 = vmatpush3.msra.mxu1 %v370_v24  ;;  %v462_v50 = vld [vmem:[#allocation8 + $0x58] sm:$0xff]  ;;  %v461_v51 = vld [vmem:[#allocation8 + $0x50] sm:$0xff]  ;;  %v460_v52 = vld [vmem:[#allocation8 + $0x48] sm:$0xff] }
  0x41   :  { %651 = vmatprep.subr.mxu0 %v867_v0  ;;  %680 = vmatprep.subr.mxu1 %v867_v0  ;;  %v459_v53 = vld [vmem:[#allocation8 + $0x40] sm:$0xff]  ;;  %v458_v54 = vld [vmem:[#allocation8 + $0x38] sm:$0xff]  ;;  %v457_v55 = vld [vmem:[#allocation8 + $0x30] sm:$0xff] }
  0x42   :  { %652 = vmatpush3.msra.mxu0 %v272_v12  ;;  %681 = vmatpush3.msra.mxu1 %v369_v25  ;;  %v456_v56 = vld [vmem:[#allocation8 + $0x28] sm:$0xff]  ;;  %v455_v57 = vld [vmem:[#allocation8 + $0x20] sm:$0xff]  ;;  %v454_v58 = vld [vmem:[#allocation8 + $0x18] sm:$0xff] }
  0x43   :  { %653 = vmatprep.subr.mxu0 %v867_v0  ;;  %682 = vmatprep.subr.mxu1 %v867_v0  ;;  %v568_v59 = vld [vmem:[%s1045_s6] ss:$0 sm:$0xff]  ;;  %v452_v2 = vld [vmem:[#allocation8 + $0x8] sm:$0xff]  ;;  %v451_v3 = vld [vmem:[#allocation8] sm:$0xff] }
  0x44   :  { %654 = vmatpush3.msra.mxu0 %v271_v13  ;;  %683 = vmatpush3.msra.mxu1 %v368_v26  ;;  %v453_v1 = vld [vmem:[#allocation8 + $0x10] sm:$0xff] }
  0x45   :  { %655 = vmatprep.subr.mxu0 %v867_v0  ;;  %684 = vmatprep.subr.mxu1 %v867_v0  ;;  %v569_v4 = vld [vmem:[%s1047_s8] ss:$0 sm:$0xff] }
  0x46   :  { %656 = vmatpush3.msra.mxu0 %v270_v14  ;;  %685 = vmatpush3.msra.mxu1 %v367_v27  ;;  %v570_v9 = vld [vmem:[%s1049_s10] ss:$0 sm:$0xff] }
  0x47   :  { %657 = vmatprep.subr.mxu0 %v867_v0  ;;  %686 = vmatprep.subr.mxu1 %v867_v0 }
  0x48   :  { %658 = vmatpush3.msra.mxu0 %v269_v15  ;;  %687 = vmatpush3.msra.mxu1 %v366_v28 }
  0x49   :  { %659 = vmatprep.subr.mxu0 %v867_v0  ;;  %688 = vmatprep.subr.mxu1 %v867_v0 }
  0x4a   :  { %660 = vmatpush3.msra.mxu0 %v268_v16  ;;  %689 = vmatpush3.msra.mxu1 %v365_v29 }
  0x4b   :  { %661 = vmatprep.subr.mxu0 %v867_v0  ;;  %690 = vmatprep.subr.mxu1 %v867_v0 }
  0x4c   :  { %662 = vmatpush3.msra.mxu0 %v267_v17  ;;  %691 = vmatpush3.msra.mxu1 %v364_v30 }
  0x4d   :  { %663 = vmatprep.subr.mxu0 %v867_v0  ;;  %692 = vmatprep.subr.mxu1 %v867_v0 }
  0x4e   :  { %664 = vmatpush3.msra.mxu0 %v266_v18  ;;  %693 = vmatpush3.msra.mxu1 %v363_v31 }
  0x4f   :  { %665 = vmatprep.subr.mxu0 %v867_v0  ;;  %694 = vmatprep.subr.mxu1 %v867_v0 }
  0x50   :  { %666 = vmatpush3.msra.mxu0 %v265_v19  ;;  %695 = vmatpush3.msra.mxu1 %v362_v32 }
  0x51   :  { %667 = vmatprep.subr.mxu0 %v867_v0  ;;  %696 = vmatprep.subr.mxu1 %v867_v0 }
  0x52   :  { %668 = vmatpush3.msra.mxu0 %v264_v20  ;;  %697 = vmatpush3.msra.mxu1 %v361_v33 }
  0x53   :  { %669 = vmatprep.subr.mxu0 %v867_v0  ;;  %698 = vmatprep.subr.mxu1 %v867_v0 }
  0x54   :  { %670 = vmatpush3.msra.mxu0 %v263_v21  ;;  %699 = vmatpush3.msra.mxu1 %v360_v34 }
  0x55   :  { %709 = vmatprep.subr.mxu0 %v867_v0  ;;  %700 = vmatprep.subr.mxu1 %v867_v0 }
  0x56   :  { %701 = vmatpush3.msra.mxu1 %v359_v43 }
  0x57   :  { %702 = vmatprep.subr.mxu1 %v867_v0 }
  0x58   :  { %703 = vmatpush3.msra.mxu1 %v358_v44 }
  0x59   :  { %704 = vmatprep.subr.mxu1 %v867_v0 }
  0x5a   :  { %705 = vmatpush3.msra.mxu1 %v357_v45 }
  0xf5   :  { %v173_v35 = vpop.f32.mrf.mxu1 }
  0xf7   :  { %v631_v36 = vpop.f32.mrf.mxu1 }
  0xf9   :  { %v250_v37 = vpop.f32.mrf.mxu1 }
  0xfa   :  { %v251_v39 = vadd.f32 %v250_v37, %v173_v35 }
  0xfb   :  { %v638_v40 = vpop.f32.mrf.mxu1 }
  0xfc   :  { %v261_v41 = vadd.f32 %v567_v38, %v251_v39 }
  0xfe   :  { %v262_v42 = vmax.f32 %v261_v41, 0.0 }
 0x100   :  { %672 = vmatmul.mubr.f32.vlgmr.msra.gmra.mxu0 %v262_v42 }
 0x101   :  { %741 = vmatprep.mubr.msk.f32.mxu0 %vm868_vm0, %v867_v0  ;;  %710 = vmatpush3.msra.mxu0 %v466_v46 }
 0x102   :  { %711 = vmatprep.subr.mxu0 %v867_v0 }
 0x103   :  { %712 = vmatpush3.msra.mxu0 %v465_v47 }
 0x104   :  { %713 = vmatprep.subr.mxu0 %v867_v0 }
 0x105   :  { %714 = vmatpush3.msra.mxu0 %v464_v48 }
 0x106   :  { %715 = vmatprep.subr.mxu0 %v867_v0 }
 0x107   :  { %716 = vmatpush3.msra.mxu0 %v463_v49 }
 0x108   :  { %717 = vmatprep.subr.mxu0 %v867_v0 }
 0x109   :  { %718 = vmatpush3.msra.mxu0 %v462_v50 }
 0x10a   :  { %719 = vmatprep.subr.mxu0 %v867_v0 }
 0x10b   :  { %720 = vmatpush3.msra.mxu0 %v461_v51 }
 0x10c   :  { %721 = vmatprep.subr.mxu0 %v867_v0 }
 0x10d   :  { %722 = vmatpush3.msra.mxu0 %v460_v52 }
 0x10e   :  { %723 = vmatprep.subr.mxu0 %v867_v0 }
 0x10f   :  { %724 = vmatpush3.msra.mxu0 %v459_v53 }
 0x110   :  { %725 = vmatprep.subr.mxu0 %v867_v0 }
 0x111   :  { %726 = vmatpush3.msra.mxu0 %v458_v54 }
 0x112   :  { %727 = vmatprep.subr.mxu0 %v867_v0 }
 0x113   :  { %728 = vmatpush3.msra.mxu0 %v457_v55 }
 0x114   :  { %729 = vmatprep.subr.mxu0 %v867_v0 }
 0x115   :  { %730 = vmatpush3.msra.mxu0 %v456_v56 }
 0x116   :  { %731 = vmatprep.subr.mxu0 %v867_v0 }
 0x117   :  { %732 = vmatpush3.msra.mxu0 %v455_v57 }
 0x118   :  { %733 = vmatprep.subr.mxu0 %v867_v0 }
 0x119   :  { %734 = vmatpush3.msra.mxu0 %v454_v58 }
 0x11a   :  { %735 = vmatprep.subr.mxu0 %v867_v0 }
 0x11b   :  { %736 = vmatpush3.msra.mxu0 %v453_v1 }
 0x11c   :  { %737 = vmatprep.subr.mxu0 %v867_v0 }
 0x11d   :  { %738 = vmatpush3.msra.mxu0 %v452_v2 }
 0x11e   :  { %739 = vmatprep.subr.mxu0 %v867_v0 }
 0x11f   :  { %740 = vmatpush3.msra.mxu0 %v451_v3 }
 0x1c0   :  { %v352_v60 = vpop.f32.mrf.mxu0 }
 0x1c1   :  { %v353_v61 = vadd.f32 %v568_v59, %v352_v60 }
 0x1c2   :  { %v673_v62 = vpop.f32.mrf.mxu0 }
 0x1c3   :  { %v356_v63 = vmax.f32 %v353_v61, 0.0 }
 0x1c5   :  { %707 = vmatmul.mubr.f32.vlgmr.msra.gmra.mxu1 %v356_v63 }
 0x285   :  { %v446_v5 = vpop.f32.mrf.mxu1 }
 0x286   :  { %v447_v6 = vadd.f32 %v569_v4, %v446_v5 }
 0x287   :  { %v708_v7 = vpop.f32.mrf.mxu1 }
 0x288   :  { %v450_v8 = vmax.f32 %v447_v6, 0.0 }
 0x28a   :  { %742 = vmatmul.mubr.f32.vlgmr.msra.gmra.mxu0 %v450_v8 }
 0x34a   :  { %v540_v10 = vpop.f32.mrf.mxu0 }
 0x34b   :  { %v541_v0 = vadd.f32 %v570_v9, %v540_v10 }
 0x34c   :  { %v743_v11 = vpop.f32.mrf.mxu0 }
 0x34d   :  { %545 = vst.msk [vmem:[#allocation10] sm:$0xff] %vm544_vm4, %v541_v0 }
 0x34e   :  { %844 = shalt.err (!%p841_p10)
}
 0x34f   :  { %555 = dma.vmem_to_hbm [thread:$0]  %s553_s26, 128, %s1050_s11, [#allocation4]  }
 0x350   :  { %859 = dma.done.wait [#allocation4], 128  }
 0x351   :  { %860 = vsyncadd [#allocation4], 4294967168 }
 0x352   :  { %559 = vsyncpa [#allocation3], 1 }
 0x353   :  { %560 = vsyncpa [#allocation6], 1 }
 0x354   :  { %561 = vsyncpa [#allocation9], 1 }
 0x355   :  { %562 = vsyncpa [#allocation4], 1 }

</bundles_post_ra>
